<compile_context>
chip_gen: v6e
topology: v6e:2x2x1
jax: 0.10.0
libtpu: 0.0.40
codegen_flags: <defaults>
</compile_context>

<pallas_src>
import jax
import jax.numpy as jnp
from jax.experimental import pallas as pl
from jax.experimental.pallas import tpu as pltpu


def _round_up(x, m):
    return ((x + m - 1) // m) * m


def _pick_tb(batch):
    """Batch tile size (rows per grid step)."""
    bp8 = _round_up(max(int(batch), 1), 8)
    if bp8 <= 256:
        return bp8                        # one tile; minimal padding for small B
    if bp8 <= 1024:
        # Exactly 2 grid steps: keeps both v7x TensorCores busy via the
        # "parallel" axis while each step stays large (>=136 rows) for MXU fill
        # and per-step-overhead amortization.  No-op cost on v5e/v6e.
        return _round_up((bp8 + 1) // 2, 8)
    return 512                            # large batches: 512-row tiles


def _actor_kernel(ma_ref, s_ref, w1_ref, b1_ref, w2_ref, b2_ref,
                  w3_ref, b3_ref, o_ref):
    max_action = ma_ref[0, 0]                       # scalar from SMEM

    # Layer 1: (TB, S)bf16 @ (S, H)bf16 -> f32 acc; bias + relu in f32.
    a = jnp.dot(s_ref[...], w1_ref[...], preferred_element_type=jnp.float32)
    a = jnp.maximum(a + b1_ref[...], 0.0)
    # TODO(synk): on v6e/v7x (bf16 VALU) the bias+relu could run in bf16 to
    # halve VPU traffic; kept f32 so the same kernel stays optimal on v5e.

    # Layer 2: (TB, H) @ (H, H)
    a = jnp.dot(a.astype(jnp.bfloat16), w2_ref[...],
                preferred_element_type=jnp.float32)
    a = jnp.maximum(a + b2_ref[...], 0.0)

    # Layer 3: (TB, H) @ (H, Ap) with lane-dense Ap; tanh/scale in f32.
    a = jnp.dot(a.astype(jnp.bfloat16), w3_ref[...],
                preferred_element_type=jnp.float32)
    o_ref[...] = max_action * jnp.tanh(a + b3_ref[...])


def prepare_actor_params(params):
    """One-time conversion to kernel layout: bf16 weights, f32 biases, final
    layer zero-padded to a lane-dense (multiple-of-128) output width."""
    A = params["w3"].shape[1]
    Ap = _round_up(A, 128)
    w3 = params["w3"].astype(jnp.bfloat16)
    b3 = params["b3"].astype(jnp.float32)
    if Ap != A:
        w3 = jnp.pad(w3, ((0, 0), (0, Ap - A)))
        b3 = jnp.pad(b3, ((0, 0), (0, Ap - A)))
    return {
        "w1": params["w1"].astype(jnp.bfloat16),
        "b1": params["b1"].astype(jnp.float32),
        "w2": params["w2"].astype(jnp.bfloat16),
        "b2": params["b2"].astype(jnp.float32),
        "w3": w3,
        "b3": b3,
        "action_dim": A,
    }


def actor_forward(state, kparams, max_action):
    """state: (B, state_dim).  kparams: output of prepare_actor_params."""
    w1, b1 = kparams["w1"], kparams["b1"]
    w2, b2 = kparams["w2"], kparams["b2"]
    w3, b3 = kparams["w3"], kparams["b3"]
    A = kparams["action_dim"]

    B, S = state.shape
    H = w1.shape[1]
    Ap = w3.shape[1]

    TB = _pick_tb(B)
    Bp = _round_up(B, TB)

    x = state.astype(jnp.bfloat16)                  # stream state as bf16
    if Bp != B:
        x = jnp.pad(x, ((0, Bp - B), (0, 0)))

    ma = jnp.full((1, 1), max_action, dtype=jnp.float32)

    const0 = lambda i: (0, 0)    # weights/biases: single DMA, VMEM-resident

    out = pl.pallas_call(
        _actor_kernel,
        out_shape=jax.ShapeDtypeStruct((Bp, Ap), jnp.float32),
        grid_spec=pltpu.PrefetchScalarGridSpec(
            num_scalar_prefetch=0,
            grid=(Bp // TB,),
            in_specs=[
                pl.BlockSpec(memory_space=pltpu.MemorySpace.SMEM),  # max_action
                pl.BlockSpec((TB, S), lambda i: (i, 0)),            # state tile
                pl.BlockSpec((S, H), const0),                       # w1
                pl.BlockSpec((1, H), const0),                       # b1
                pl.BlockSpec((H, H), const0),                       # w2
                pl.BlockSpec((1, H), const0),                       # b2
                pl.BlockSpec((H, Ap), const0),                      # w3 (padded)
                pl.BlockSpec((1, Ap), const0),                      # b3 (padded)
            ],
            out_specs=pl.BlockSpec((TB, Ap), lambda i: (i, 0)),
        ),
        compiler_params=pltpu.CompilerParams(
            dimension_semantics=("parallel",),
        ),
    )(ma, x, w1, b1, w2, b2, w3, b3)

    # Padded rows/lanes carry throwaway values; slice them off here.
    return out[:B, :A]


def init_actor_params(key, state_dim, action_dim, hidden=256):
    """Deterministic PyTorch-Linear-style init: U(-1/sqrt(fan_in), 1/sqrt(fan_in)).
    Weights stored as (in, out) f32 master copies."""
    ks = jax.random.split(key, 6)

    def lin(kw, kb, fan_in, fan_out):
        bound = 1.0 / jnp.sqrt(float(fan_in))
        w = jax.random.uniform(kw, (fan_in, fan_out), jnp.float32, -bound, bound)
        b = jax.random.uniform(kb, (1, fan_out), jnp.float32, -bound, bound)
        return w, b

    w1, b1 = lin(ks[0], ks[1], state_dim, hidden)
    w2, b2 = lin(ks[2], ks[3], hidden, hidden)
    w3, b3 = lin(ks[4], ks[5], hidden, action_dim)
    return {"w1": w1, "b1": b1, "w2": w2, "b2": b2, "w3": w3, "b3": b3}


def actor_reference_bf16(state, params, max_action):
    """Same numerics as the kernel: bf16 operands into the dots, f32 accumulate."""
    w1 = params["w1"].astype(jnp.bfloat16)
    w2 = params["w2"].astype(jnp.bfloat16)
    w3 = params["w3"].astype(jnp.bfloat16)
    a = jnp.dot(state.astype(jnp.bfloat16), w1,
                preferred_element_type=jnp.float32) + params["b1"]
    a = jnp.maximum(a, 0.0)
    a = jnp.dot(a.astype(jnp.bfloat16), w2,
                preferred_element_type=jnp.float32) + params["b2"]
    a = jnp.maximum(a, 0.0)
    a = jnp.dot(a.astype(jnp.bfloat16), w3,
                preferred_element_type=jnp.float32) + params["b3"]
    return max_action * jnp.tanh(a)


def actor_reference_f32(state, params, max_action):
    """Pure-f32 PyTorch-semantics reference."""
    a = jnp.maximum(state @ params["w1"] + params["b1"], 0.0)
    a = jnp.maximum(a @ params["w2"] + params["b2"], 0.0)
    return max_action * jnp.tanh(a @ params["w3"] + params["b3"])


if __name__ == "__main__":
    key = jax.random.PRNGKey(0)
    k_state, k_params = jax.random.split(key)

    batch = 2
    state_dim = 16
    action_dim = 4
    max_action = 2.5

    state = jax.random.normal(k_state, (batch, state_dim), jnp.float32)
    params = init_actor_params(k_params, state_dim, action_dim)
    kparams = prepare_actor_params(params)     # one-time bf16 / lane-pad prep

    out = actor_forward(state, kparams, max_action)
    out = jax.block_until_ready(out)
    assert out.shape == (batch, action_dim)

    # Tight check against a reference with identical bf16-weight numerics.
    ref_bf16 = actor_reference_bf16(state, params, max_action)
    assert jnp.allclose(out, ref_bf16, atol=1e-3, rtol=1e-3), \
        "mismatch vs bf16-matched JAX reference"

    # Loose check against the pure-f32 PyTorch-semantics reference
    # (bf16 weight storage introduces ~1e-2-level relative differences).
    ref_f32 = actor_reference_f32(state, params, max_action)
    assert jnp.allclose(out, ref_f32, atol=5e-2, rtol=5e-2), \
        "mismatch vs f32 JAX reference"

    # Exercise the multi-step (2-tile, "parallel") grid path as well.
    big_state = jax.random.normal(k_state, (300, state_dim), jnp.float32)
    big_out = jax.block_until_ready(actor_forward(big_state, kparams, max_action))
    assert big_out.shape == (300, action_dim)
    big_ref = actor_reference_bf16(big_state, params, max_action)
    assert jnp.allclose(big_out, big_ref, atol=1e-3, rtol=1e-3), \
        "mismatch vs bf16-matched JAX reference (batched path)"

    print("KERNEL_OK")
</pallas_src>

<mosaic_0001>
module attributes {stable_mosaic.version = 11 : i64} {
  func.func @_actor_kernel(%arg0: i32, %arg1: memref<1x1xf32, #tpu.memory_space<smem>>, %arg2: memref<8x16xbf16, #tpu.memory_space<vmem>>, %arg3: memref<16x256xbf16, #tpu.memory_space<vmem>>, %arg4: memref<1x256xf32, #tpu.memory_space<vmem>>, %arg5: memref<256x256xbf16, #tpu.memory_space<vmem>>, %arg6: memref<1x256xf32, #tpu.memory_space<vmem>>, %arg7: memref<256x128xbf16, #tpu.memory_space<vmem>>, %arg8: memref<1x128xf32, #tpu.memory_space<vmem>>, %arg9: memref<8x128xf32, #tpu.memory_space<vmem>>) attributes {dimension_semantics = [#tpu.dimension_semantics<parallel>], iteration_bounds = array<i64: 1>, scalar_prefetch = 0 : i64, scratch_operands = 0 : i64, tpu.core_type = #tpu.core_type<tc>, window_params = [{transform_indices = @transform_0, window_bounds = array<i64: 1, 1>}, {transform_indices = @transform_1, window_bounds = array<i64: 8, 16>}, {pipeline_mode = #tpu.pipeline_mode<synchronous>, transform_indices = @transform_2, window_bounds = array<i64: 16, 256>}, {pipeline_mode = #tpu.pipeline_mode<synchronous>, transform_indices = @transform_3, window_bounds = array<i64: 1, 256>}, {pipeline_mode = #tpu.pipeline_mode<synchronous>, transform_indices = @transform_4, window_bounds = array<i64: 256, 256>}, {pipeline_mode = #tpu.pipeline_mode<synchronous>, transform_indices = @transform_5, window_bounds = array<i64: 1, 256>}, {pipeline_mode = #tpu.pipeline_mode<synchronous>, transform_indices = @transform_6, window_bounds = array<i64: 256, 128>}, {pipeline_mode = #tpu.pipeline_mode<synchronous>, transform_indices = @transform_7, window_bounds = array<i64: 1, 128>}, {transform_indices = @transform_8, window_bounds = array<i64: 8, 128>}]} {
    %c0 = arith.constant 0 : index
    %c0_0 = arith.constant 0 : index
    %0 = memref.load %arg1[%c0, %c0_0] : memref<1x1xf32, #tpu.memory_space<smem>>
    %c0_1 = arith.constant 0 : index
    %c0_2 = arith.constant 0 : index
    %1 = vector.load %arg2[%c0_1, %c0_2] : memref<8x16xbf16, #tpu.memory_space<vmem>>, vector<8x16xbf16>
    %c0_3 = arith.constant 0 : index
    %c0_4 = arith.constant 0 : index
    %2 = vector.load %arg3[%c0_3, %c0_4] : memref<16x256xbf16, #tpu.memory_space<vmem>>, vector<16x256xbf16>
    %cst = arith.constant dense<0.000000e+00> : vector<8x256xf32>
    %3 = tpu.matmul %1, %2, %cst {dimension_numbers = #tpu.dot_dimension_numbers<[1], [0], [0], [1], [0, 0, 1, 1], [], []>} : vector<8x16xbf16>, vector<16x256xbf16>, vector<8x256xf32> -> vector<8x256xf32>
    %c0_5 = arith.constant 0 : index
    %c0_6 = arith.constant 0 : index
    %4 = vector.load %arg4[%c0_5, %c0_6] : memref<1x256xf32, #tpu.memory_space<vmem>>, vector<1x256xf32>
    %5 = vector.broadcast %4 : vector<1x256xf32> to vector<8x256xf32>
    %6 = arith.addf %3, %5 : vector<8x256xf32>
    %cst_7 = arith.constant 0.000000e+00 : f32
    %7 = vector.broadcast %cst_7 : f32 to vector<8x256xf32>
    %8 = arith.maximumf %6, %7 : vector<8x256xf32>
    %9 = arith.truncf %8 : vector<8x256xf32> to vector<8x256xbf16>
    %c0_8 = arith.constant 0 : index
    %c0_9 = arith.constant 0 : index
    %10 = vector.load %arg5[%c0_8, %c0_9] : memref<256x256xbf16, #tpu.memory_space<vmem>>, vector<256x256xbf16>
    %cst_10 = arith.constant dense<0.000000e+00> : vector<8x256xf32>
    %11 = tpu.matmul %9, %10, %cst_10 {dimension_numbers = #tpu.dot_dimension_numbers<[1], [0], [0], [1], [0, 0, 1, 1], [], []>} : vector<8x256xbf16>, vector<256x256xbf16>, vector<8x256xf32> -> vector<8x256xf32>
    %c0_11 = arith.constant 0 : index
    %c0_12 = arith.constant 0 : index
    %12 = vector.load %arg6[%c0_11, %c0_12] : memref<1x256xf32, #tpu.memory_space<vmem>>, vector<1x256xf32>
    %13 = vector.broadcast %12 : vector<1x256xf32> to vector<8x256xf32>
    %14 = arith.addf %11, %13 : vector<8x256xf32>
    %cst_13 = arith.constant 0.000000e+00 : f32
    %15 = vector.broadcast %cst_13 : f32 to vector<8x256xf32>
    %16 = arith.maximumf %14, %15 : vector<8x256xf32>
    %17 = arith.truncf %16 : vector<8x256xf32> to vector<8x256xbf16>
    %c0_14 = arith.constant 0 : index
    %c0_15 = arith.constant 0 : index
    %18 = vector.load %arg7[%c0_14, %c0_15] : memref<256x128xbf16, #tpu.memory_space<vmem>>, vector<256x128xbf16>
    %cst_16 = arith.constant dense<0.000000e+00> : vector<8x128xf32>
    %19 = tpu.matmul %17, %18, %cst_16 {dimension_numbers = #tpu.dot_dimension_numbers<[1], [0], [0], [1], [0, 0, 1, 1], [], []>} : vector<8x256xbf16>, vector<256x128xbf16>, vector<8x128xf32> -> vector<8x128xf32>
    %c0_17 = arith.constant 0 : index
    %c0_18 = arith.constant 0 : index
    %20 = vector.load %arg8[%c0_17, %c0_18] : memref<1x128xf32, #tpu.memory_space<vmem>>, vector<1x128xf32>
    %21 = vector.broadcast %20 : vector<1x128xf32> to vector<8x128xf32>
    %22 = arith.addf %19, %21 : vector<8x128xf32>
    %23 = math.tanh %22 : vector<8x128xf32>
    %24 = vector.broadcast %0 : f32 to vector<8x128xf32>
    %25 = arith.mulf %24, %23 : vector<8x128xf32>
    %c0_19 = arith.constant 0 : index
    %c0_20 = arith.constant 0 : index
    %26 = vector.load %arg9[%c0_19, %c0_20] : memref<8x128xf32, #tpu.memory_space<vmem>>, vector<8x128xf32>
    tpu.vector_store %arg9[%c0_19, %c0_20], %25 {strides = array<i32>} : memref<8x128xf32, #tpu.memory_space<vmem>>, vector<8x128xf32>,
    return
  }
  func.func @transform_0(%arg0: i32) -> (i32, i32) {
    %c0_i32 = arith.constant 0 : i32
    %c0_i32_0 = arith.constant 0 : i32
    %c0_i32_1 = arith.constant 0 : i32
    return %c0_i32, %c0_i32_0 : i32, i32
  }
  func.func @transform_1(%arg0: i32) -> (i32, i32) {
    %c0_i32 = arith.constant 0 : i32
    %c0_i32_0 = arith.constant 0 : i32
    return %arg0, %c0_i32 : i32, i32
  }
  func.func @transform_2(%arg0: i32) -> (i32, i32) {
    %c0_i32 = arith.constant 0 : i32
    %c0_i32_0 = arith.constant 0 : i32
    %c0_i32_1 = arith.constant 0 : i32
    return %c0_i32, %c0_i32_0 : i32, i32
  }
  func.func @transform_3(%arg0: i32) -> (i32, i32) {
    %c0_i32 = arith.constant 0 : i32
    %c0_i32_0 = arith.constant 0 : i32
    %c0_i32_1 = arith.constant 0 : i32
    return %c0_i32, %c0_i32_0 : i32, i32
  }
  func.func @transform_4(%arg0: i32) -> (i32, i32) {
    %c0_i32 = arith.constant 0 : i32
    %c0_i32_0 = arith.constant 0 : i32
    %c0_i32_1 = arith.constant 0 : i32
    return %c0_i32, %c0_i32_0 : i32, i32
  }
  func.func @transform_5(%arg0: i32) -> (i32, i32) {
    %c0_i32 = arith.constant 0 : i32
    %c0_i32_0 = arith.constant 0 : i32
    %c0_i32_1 = arith.constant 0 : i32
    return %c0_i32, %c0_i32_0 : i32, i32
  }
  func.func @transform_6(%arg0: i32) -> (i32, i32) {
    %c0_i32 = arith.constant 0 : i32
    %c0_i32_0 = arith.constant 0 : i32
    %c0_i32_1 = arith.constant 0 : i32
    return %c0_i32, %c0_i32_0 : i32, i32
  }
  func.func @transform_7(%arg0: i32) -> (i32, i32) {
    %c0_i32 = arith.constant 0 : i32
    %c0_i32_0 = arith.constant 0 : i32
    %c0_i32_1 = arith.constant 0 : i32
    return %c0_i32, %c0_i32_0 : i32, i32
  }
  func.func @transform_8(%arg0: i32) -> (i32, i32) {
    %c0_i32 = arith.constant 0 : i32
    %c0_i32_0 = arith.constant 0 : i32
    return %arg0, %c0_i32 : i32, i32
  }
}

</mosaic_0001>

<bundles_post_ra>
// kernel: tpu_custom_call.1
= control target key start
LH: loop header
LB: loop body
LE: loop exit
PB: predicated region body
PF: predicated region fallthrough
CT: control target
= control target key end

     0   :  { %14 = vsyncpa [#allocation4], 0  ;;  %s948_s0 = inlined_call_operand.<no memory space> [shape: f32[1,1], index: 0, kind: input, shape index: {}]   ;;  %s949_s1 = inlined_call_operand.hbm [shape: bf16[8,16], index: 1, kind: input, shape index: {}]   ;;  %s950_s2 = inlined_call_operand.hbm [shape: bf16[16,256], index: 2, kind: input, shape index: {}]   ;;  %s951_s3 = inlined_call_operand.vmem [shape: f32[1,256], index: 3, kind: input, shape index: {}]   ;;  %s952_s4 = inlined_call_operand.hbm [shape: bf16[256,256], index: 4, kind: input, shape index: {}]   ;;  %s953_s5 = inlined_call_operand.vmem [shape: f32[1,256], index: 5, kind: input, shape index: {}]   ;;  %s954_s6 = inlined_call_operand.hbm [shape: bf16[256,128], index: 6, kind: input, shape index: {}]   ;;  %s955_s7 = inlined_call_operand.vmem [shape: f32[1,128], index: 7, kind: input, shape index: {}]   ;;  %s956_s8 = inlined_call_operand.hbm [shape: f32[8,128], index: 8, kind: output, shape index: {}]  }
   0x1   :  { %15 = vsyncpa [#allocation7], 0 }
   0x2   :  { %16 = vsyncpa [#allocation10], 0 }
   0x3   :  { %17 = vsyncpa [#allocation5], 0  ;;  %s866_s27 = smov [#allocation6]  }
   0x4   :  { %s35_s28 = sshll.u32 %s866_s27, 4  ;;  %s36_s28 = int_to_ptr.vmem [resolvable:$true] %s35_s28 }
   0x5   :  { %s766_s29 = scalar_lea.vmem %s36_s28, 256  ;;  %p771_p1 = scmp.lt.s32.totalorder %s36_s28, %s36_s28 }
   0x6   :  { %p767_p0 = scmp.ne.s32.totalorder %s36_s28, %s766_s29  ;;  %p772_p2 = scmp.lt.s32.totalorder %s766_s29, %s766_s29 }
   0x8   :  { %p773_p3 = por %p772_p2, %p771_p1 }
   0xa   :  { %p774_p4 = pnand %p773_p3, %p767_p0 }
   0xc   :  { %777 = shalt.err (!%p774_p4)
}
   0xd   :  { %s867_s30 = smov 128   ;;  %s868_s9 = smov 8  }
   0xe   :  { %41 = dma.hbm_to_vmem [thread:$0]  %s950_s2, 256, %s36_s28, [#allocation7], %s867_s30, %s867_s30, %s868_s9  }
   0xf   :  { %s869_s12 = smov [#allocation3]   ;;  %s870_s14 = smov [#allocation8]  }
  0x10   :  { %s26_s13 = sshll.u32 %s869_s12, 4  ;;  %s49_s15 = sshll.u32 %s870_s14, 4  ;;  %s27_s13 = int_to_ptr.vmem [resolvable:$true] %s26_s13  ;;  %s50_s15 = int_to_ptr.vmem [resolvable:$true] %s49_s15 }
  0x11   :  { %s786_s16 = scalar_lea.vmem %s27_s13, 64  ;;  %p791_p6 = scmp.lt.s32.totalorder %s27_s13, %s27_s13 }
  0x12   :  { %p787_p5 = scmp.ne.s32.totalorder %s27_s13, %s786_s16  ;;  %p792_p7 = scmp.lt.s32.totalorder %s786_s16, %s786_s16 }
  0x14   :  { %p793_p8 = por %p792_p7, %p791_p6 }
  0x16   :  { %p794_p9 = pnand %p793_p8, %p787_p5 }
  0x18   :  { %797 = shalt.err (!%p794_p9)
}
  0x19   :  { %29 = dma.hbm_to_vmem [thread:$0]  %s949_s1, 64, %s27_s13, [#allocation4]  }
  0x1a   :  { %s806_s19 = scalar_lea.vmem %s50_s15, 4096  ;;  %p811_p11 = scmp.lt.s32.totalorder %s50_s15, %s50_s15 }
  0x1b   :  { %p807_p10 = scmp.ne.s32.totalorder %s50_s15, %s806_s19  ;;  %p812_p12 = scmp.lt.s32.totalorder %s806_s19, %s806_s19 }
  0x1d   :  { %p813_p13 = por %p812_p12, %p811_p11 }
  0x1f   :  { %p814_p0 = pnand %p813_p13, %p807_p10 }
  0x21   :  { %817 = shalt.err (!%p814_p0)
}
  0x22   :  { %55 = dma.hbm_to_vmem [thread:$0]  %s952_s4, 4096, %s50_s15, [#allocation7], %s867_s30, %s867_s30, %s868_s9  }
  0x23   :  { %s871_s21 = smov [#allocation9]  }
  0x24   :  { %s63_s22 = sshll.u32 %s871_s21, 4  ;;  %s64_s22 = int_to_ptr.vmem [resolvable:$true] %s63_s22 }
  0x25   :  { %s826_s23 = scalar_lea.vmem %s64_s22, 2048  ;;  %p831_p2 = scmp.lt.s32.totalorder %s64_s22, %s64_s22 }
  0x26   :  { %p827_p1 = scmp.ne.s32.totalorder %s64_s22, %s826_s23  ;;  %p832_p3 = scmp.lt.s32.totalorder %s826_s23, %s826_s23 }
  0x28   :  { %p833_p4 = por %p832_p3, %p831_p2 }
  0x2a   :  { %p834_p5 = pnand %p833_p4, %p827_p1 }
  0x2c   :  { %837 = shalt.err (!%p834_p5)
}
  0x2d   :  { %s872_s1 = smov 64   ;;  %s873_s24 = smov 4  }
  0x2e   :  { %69 = dma.hbm_to_vmem [thread:$0]  %s954_s6, 2048, %s64_s22, [#allocation10], %s872_s1, %s872_s1, %s873_s24  }
  0x2f   :  { %858 = dma.done.wait [#allocation4], 64  }
  0x30   :  { %859 = vsyncadd [#allocation4], 4294967232 }
  0x31   :  { %860 = dma.done.wait [#allocation7], 4352  }
  0x32   :  { %861 = vsyncadd [#allocation7], 4294962944 }
  0x33   :  { %862 = dma.done.wait [#allocation10], 2048  }
  0x34   :  { %863 = vsyncadd [#allocation10], 4294965248  ;;  %v874_v0 = vmov 0   ;;  %v689_v1 = vld [vmem:[#allocation6 + $0x4] ss:$8 sps:$4 sm:$0xff]   ;;  %vm111_vm0 = vcmask 130048   ;;  %v91_v48 = vlaneseq }
  0x35   :  { %147 = vmatprep.mubr.bf16.mxu0 %v874_v0  ;;  %v691_v2 = vld [vmem:[#allocation6] ss:$8 sps:$4 sm:$0xff]   ;;  %v86_v3 = vld [vmem:[#allocation3] sm:$0xf]  ;;  %129 = vmatprep.subr.bf16.mxu0 %v689_v1  ;;  %v692_v4 = vld [vmem:[#allocation8 + $0x74] ss:$8 sps:$4 sm:$0xff]  }
  0x36   :  { %v694_v5 = vld [vmem:[#allocation8 + $0x70] ss:$8 sps:$4 sm:$0xff]   ;;  %130 = vmatpush1.bf16.msra.mxu0 %v691_v2  ;;  %v695_v6 = vld [vmem:[#allocation8 + $0x64] ss:$8 sps:$4 sm:$0xff]   ;;  %364 = vmatprep.subr.bf16.mxu1 %v692_v4  ;;  %v697_v7 = vld [vmem:[#allocation8 + $0x60] ss:$8 sps:$4 sm:$0xff]  }
  0x37   :  { %365 = vmatpush1.bf16.msra.mxu1 %v694_v5  ;;  %v698_v8 = vld [vmem:[#allocation8 + $0x54] ss:$8 sps:$4 sm:$0xff]   ;;  %v700_v9 = vld [vmem:[#allocation8 + $0x50] ss:$8 sps:$4 sm:$0xff]   ;;  %v701_v10 = vld [vmem:[#allocation8 + $0x44] ss:$8 sps:$4 sm:$0xff]  }
  0x38   :  { %366 = vmatprep.subr.bf16.mxu1 %v695_v6  ;;  %v703_v11 = vld [vmem:[#allocation8 + $0x40] ss:$8 sps:$4 sm:$0xff]   ;;  %v704_v12 = vld [vmem:[#allocation8 + $0x34] ss:$8 sps:$4 sm:$0xff]   ;;  %v706_v13 = vld [vmem:[#allocation8 + $0x30] ss:$8 sps:$4 sm:$0xff]  }
  0x39   :  { %607 = vmatmul.mubr.msk.bf16.vlgmr.msra.gmra.mxu0 %vm111_vm0, %v86_v3  ;;  %v707_v14 = vld [vmem:[#allocation8 + $0x24] ss:$8 sps:$4 sm:$0xff]   ;;  %v709_v15 = vld [vmem:[#allocation8 + $0x20] ss:$8 sps:$4 sm:$0xff]   ;;  %v710_v16 = vld [vmem:[#allocation8 + $0x14] ss:$8 sps:$4 sm:$0xff]  }
  0x3a   :  { %v712_v17 = vld [vmem:[#allocation8 + $0x10] ss:$8 sps:$4 sm:$0xff]   ;;  %v713_v18 = vld [vmem:[#allocation8 + $0x4] ss:$8 sps:$4 sm:$0xff]   ;;  %v715_v19 = vld [vmem:[#allocation8] ss:$8 sps:$4 sm:$0xff]  }
  0x3b   :  { %367 = vmatpush1.bf16.msra.mxu1 %v697_v7  ;;  %v716_v20 = vld [vmem:[#allocation8 + $0xf4] ss:$8 sps:$4 sm:$0xff]   ;;  %v718_v21 = vld [vmem:[#allocation8 + $0xf0] ss:$8 sps:$4 sm:$0xff]   ;;  %v719_v22 = vld [vmem:[#allocation8 + $0xe4] ss:$8 sps:$4 sm:$0xff]  }
  0x3c   :  { %368 = vmatprep.subr.bf16.mxu1 %v698_v8  ;;  %v721_v23 = vld [vmem:[#allocation8 + $0xe0] ss:$8 sps:$4 sm:$0xff]   ;;  %v722_v24 = vld [vmem:[#allocation8 + $0xd4] ss:$8 sps:$4 sm:$0xff]   ;;  %v724_v25 = vld [vmem:[#allocation8 + $0xd0] ss:$8 sps:$4 sm:$0xff]  }
  0x3d   :  { %v725_v26 = vld [vmem:[#allocation8 + $0xc4] ss:$8 sps:$4 sm:$0xff]   ;;  %v727_v27 = vld [vmem:[#allocation8 + $0xc0] ss:$8 sps:$4 sm:$0xff]   ;;  %v728_v28 = vld [vmem:[#allocation8 + $0xb4] ss:$8 sps:$4 sm:$0xff]  }
  0x3e   :  { %v730_v29 = vld [vmem:[#allocation8 + $0xb0] ss:$8 sps:$4 sm:$0xff]   ;;  %v731_v30 = vld [vmem:[#allocation8 + $0xa4] ss:$8 sps:$4 sm:$0xff]   ;;  %v733_v31 = vld [vmem:[#allocation8 + $0xa0] ss:$8 sps:$4 sm:$0xff]  }
  0x3f   :  { %369 = vmatpush1.bf16.msra.mxu1 %v700_v9  ;;  %v734_v32 = vld [vmem:[#allocation8 + $0x94] ss:$8 sps:$4 sm:$0xff]   ;;  %v736_v33 = vld [vmem:[#allocation8 + $0x90] ss:$8 sps:$4 sm:$0xff]   ;;  %v737_v34 = vld [vmem:[#allocation8 + $0x84] ss:$8 sps:$4 sm:$0xff]  }
  0x40   :  { %370 = vmatprep.subr.bf16.mxu1 %v701_v10  ;;  %v739_v35 = vld [vmem:[#allocation8 + $0x80] ss:$8 sps:$4 sm:$0xff]   ;;  %v740_v36 = vld [vmem:[#allocation9 + $0x78] sm:$0xff]   ;;  %v742_v38 = vld [vmem:[#allocation9 + $0x70] sm:$0xff]   ;;  %v92_v49 = vshrl.u32 %v91_v48, 7  ;;  %s875_s9 = smov [#allocation11]  }
  0x41   :  { %v741_v37 = vld [vmem:[#allocation9 + $0x38] sm:$0xff]   ;;  %657 = vmatprep.subr.bf16.mxu0 %v740_v36  ;;  %v743_v39 = vld [vmem:[#allocation9 + $0x30] sm:$0xff]   ;;  %v744_v40 = vld [vmem:[#allocation9 + $0x68] sm:$0xff]   ;;  %s594_s10 = sshll.u32 %s875_s9, 4  ;;  %s595_s10 = int_to_ptr.vmem [resolvable:$true] %s594_s10 }
  0x42   :  { %658 = vmatpush3.bf16.msra.mxu0 %v741_v37  ;;  %v745_v41 = vld [vmem:[#allocation9 + $0x28] sm:$0xff]   ;;  %v746_v42 = vld [vmem:[#allocation9 + $0x60] sm:$0xff]   ;;  %v748_v44 = vld [vmem:[#allocation9 + $0x58] sm:$0xff]   ;;  %v93_v50 = vsub.s32 0, %v92_v49  ;;  %v97_v52 = vsub.s32 1, %v92_v49  ;;  %s838_s11 = scalar_lea.vmem %s595_s10, 128  ;;  %p843_p7 = scmp.lt.s32.totalorder %s595_s10, %s595_s10 }
  0x43   :  { %371 = vmatpush1.bf16.msra.mxu1 %v703_v11  ;;  %659 = vmatprep.subr.bf16.mxu0 %v742_v38  ;;  %v747_v43 = vld [vmem:[#allocation9 + $0x20] sm:$0xff]   ;;  %v749_v45 = vld [vmem:[#allocation9 + $0x18] sm:$0xff]   ;;  %v750_v46 = vld [vmem:[#allocation9 + $0x50] sm:$0xff]   ;;  %p839_p6 = scmp.ne.s32.totalorder %s595_s10, %s838_s11  ;;  %p844_p8 = scmp.lt.s32.totalorder %s838_s11, %s838_s11 }
  0x44   :  { %372 = vmatprep.subr.bf16.mxu1 %v704_v12  ;;  %v751_v47 = vld [vmem:[#allocation9 + $0x10] sm:$0xff]   ;;  %v89_v51 = vld [vmem:[%s951_s3] sm:$0x3]  ;;  %v754_v3 = vld [vmem:[#allocation9 + $0x40] sm:$0xff]  }
  0x45   :  { %v94_v53 = vrot.slane %v89_v51, %v93_v50  ;;  %v98_v54 = vrot.slane %v89_v51, %v97_v52  ;;  %v752_v1 = vld [vmem:[#allocation9 + $0x48] sm:$0xff]   ;;  %v755_v4 = vld [vmem:[#allocation9] sm:$0xff]   ;;  %p845_p9 = por %p844_p8, %p843_p7 }
  0x46   :  { %660 = vmatpush3.bf16.msra.mxu0 %v743_v39  ;;  %v753_v2 = vld [vmem:[#allocation9 + $0x8] sm:$0xff]  }
  0x47   :  { %373 = vmatpush1.bf16.msra.mxu1 %v706_v13  ;;  %661 = vmatprep.subr.bf16.mxu0 %v744_v40  ;;  %v192_v5 = vld [vmem:[%s953_s5] sm:$0x3]  ;;  %p846_p10 = pnand %p845_p9, %p839_p6 }
  0x48   :  { %374 = vmatprep.subr.bf16.mxu1 %v707_v14  ;;  %v197_v6 = vrot.slane %v192_v5, %v93_v50  ;;  %v201_v7 = vrot.slane %v192_v5, %v97_v52 }
  0x4a   :  { %662 = vmatpush3.bf16.msra.mxu0 %v745_v41 }
  0x4b   :  { %375 = vmatpush1.bf16.msra.mxu1 %v709_v15  ;;  %663 = vmatprep.subr.bf16.mxu0 %v746_v42 }
  0x4c   :  { %376 = vmatprep.subr.bf16.mxu1 %v710_v16 }
  0x4e   :  { %664 = vmatpush3.bf16.msra.mxu0 %v747_v43 }
  0x4f   :  { %377 = vmatpush1.bf16.msra.mxu1 %v712_v17  ;;  %665 = vmatprep.subr.bf16.mxu0 %v748_v44 }
  0x50   :  { %378 = vmatprep.subr.bf16.mxu1 %v713_v18 }
  0x52   :  { %666 = vmatpush3.bf16.msra.mxu0 %v749_v45 }
  0x53   :  { %379 = vmatpush1.bf16.msra.mxu1 %v715_v19  ;;  %667 = vmatprep.subr.bf16.mxu0 %v750_v46  ;;  %v640_v19 = vld [vmem:[%s955_s7] ss:$0 sm:$0xff] }
  0x54   :  { %380 = vmatprep.subr.bf16.mxu1 %v716_v20 }
  0x56   :  { %668 = vmatpush3.bf16.msra.mxu0 %v751_v47 }
  0x57   :  { %381 = vmatpush2.bf16.msra.mxu1 %v718_v21  ;;  %669 = vmatprep.subr.bf16.mxu0 %v752_v1 }
  0x58   :  { %382 = vmatprep.subr.bf16.mxu1 %v719_v22 }
  0x5a   :  { %670 = vmatpush3.bf16.msra.mxu0 %v753_v2 }
  0x5b   :  { %383 = vmatpush2.bf16.msra.mxu1 %v721_v23  ;;  %671 = vmatprep.subr.bf16.mxu0 %v754_v3 }
  0x5c   :  { %384 = vmatprep.subr.bf16.mxu1 %v722_v24 }
  0x5e   :  { %672 = vmatpush3.bf16.msra.mxu0 %v755_v4 }
  0x5f   :  { %385 = vmatpush2.bf16.msra.mxu1 %v724_v25  ;;  %v585_v25 = vstv %s948_s0 }
  0x60   :  { %386 = vmatprep.subr.bf16.mxu1 %v725_v26 }
  0x63   :  { %387 = vmatpush2.bf16.msra.mxu1 %v727_v27 }
  0x64   :  { %388 = vmatprep.subr.bf16.mxu1 %v728_v28 }
  0x67   :  { %389 = vmatpush2.bf16.msra.mxu1 %v730_v29 }
  0x68   :  { %390 = vmatprep.subr.bf16.mxu1 %v731_v30 }
  0x6b   :  { %391 = vmatpush2.bf16.msra.mxu1 %v733_v31 }
  0x6c   :  { %392 = vmatprep.subr.bf16.mxu1 %v734_v32 }
  0x6f   :  { %393 = vmatpush2.bf16.msra.mxu1 %v736_v33 }
  0x70   :  { %394 = vmatprep.subr.bf16.mxu1 %v737_v34 }
  0x73   :  { %395 = vmatpush2.bf16.msra.mxu1 %v739_v35 }
  0xf9   :  { %v149_v55 = vpop.f32.mrf.mxu0 }
  0xfa   :  { %v150_v56 = vadd.f32 %v149_v55, %v94_v53 }
  0xfb   :  { %v151_v57 = vpop.f32.mrf.mxu0 }
  0xfc   :  { %v152_v58 = vadd.f32 %v151_v57, %v98_v54  ;;  %v156_v59 = vmax.f32 %v150_v56, 0.0 }
  0xfd   :  { %v153_v60 = vpop.f32.mrf.mxu0 }
  0xfe   :  { %v157_v61 = vmax.f32 %v152_v58, 0.0  ;;  %v158_v0 = vpack.c.bf16 %v156_v59, %v156_v59 }
  0xff   :  { %v154_v62 = vpop.f32.mrf.mxu0 }
 0x100   :  { %v159_v63 = vpack.c.bf16 %v157_v61, %v157_v61 }
 0x102   :  { %396 = vmatprep.mubr.bf16.mxu1 %v159_v63 }
 0x103   :  { %397 = vmatmul.mubr.bf16.vlgmr.msra.gmra.mxu1 %v158_v0 }
 0x1c3   :  { %v398_v8 = vpop.f32.mrf.mxu1 }
 0x1c4   :  { %v399_v9 = vadd.f32 %v398_v8, %v197_v6 }
 0x1c5   :  { %v400_v10 = vpop.f32.mrf.mxu1 }
 0x1c6   :  { %v401_v11 = vadd.f32 %v400_v10, %v201_v7  ;;  %v405_v12 = vmax.f32 %v399_v9, 0.0 }
 0x1c7   :  { %v402_v13 = vpop.f32.mrf.mxu1 }
 0x1c8   :  { %v406_v14 = vmax.f32 %v401_v11, 0.0  ;;  %v407_v17 = vpack.c.bf16 %v405_v12, %v405_v12 }
 0x1c9   :  { %v403_v15 = vpop.f32.mrf.mxu1 }
 0x1ca   :  { %v408_v16 = vpack.c.bf16 %v406_v14, %v406_v14 }
 0x1cc   :  { %576 = vmatprep.mubr.bf16.mxu0 %v408_v16 }
 0x1cd   :  { %577 = vmatmul.mubr.bf16.vlgmr.msra.gmra.mxu0 %v407_v17 }
 0x28d   :  { %v673_v18 = vpop.f32.mrf.mxu0 }
 0x28f   :  { %v674_v20 = vpop.f32.mrf.mxu0 }
 0x290   :  { %v675_v21 = vadd.f32 %v674_v20, %v673_v18 }
 0x291   :  { %v676_v22 = vpop.f32.mrf.mxu0 }
 0x292   :  { %v579_v23 = vadd.f32 %v675_v21, %v640_v19 }
 0x293   :  { %v677_v24 = vpop.f32.mrf.mxu0 }
 0x294   :  { %756 = vtanh.f32 %v579_v23 }
 0x2a1   :  { %v757_v26 = vpop.eup %756 }
 0x2a2   :  { %v586_v27 = vmul.f32 %v757_v26, %v585_v25 }
 0x2a4   :  { %587 = vst [vmem:[#allocation11] sm:$0xff] %v586_v27 }
 0x2a5   :  { %849 = shalt.err (!%p846_p10)
}
 0x2a6   :  { %597 = dma.vmem_to_hbm [thread:$0]  %s595_s10, 128, %s956_s8, [#allocation5]  }
 0x2a7   :  { %864 = dma.done.wait [#allocation5], 128  }
 0x2a8   :  { %865 = vsyncadd [#allocation5], 4294967168 }
 0x2a9   :  { %601 = vsyncpa [#allocation4], 1 }
 0x2aa   :  { %602 = vsyncpa [#allocation7], 1 }
 0x2ab   :  { %603 = vsyncpa [#allocation10], 1 }
 0x2ac   :  { %604 = vsyncpa [#allocation5], 1 }

</bundles_post_ra>
